<compile_context>
chip_gen: v7x
topology: tpu7x:2x2x1
jax: 0.10.0
libtpu: 0.0.40
codegen_flags: <defaults>
</compile_context>

<pallas_src>
import functools

import jax
import jax.numpy as jnp
from jax.experimental import pallas as pl
from jax.experimental.pallas import tpu as pltpu

_F32 = jnp.float32
_PACK = 16          # samples packed per 128-lane row (128 lanes / 8 input features)
_IN = 8
_H1 = 6
_H2 = 4
_OUT = 1


def mlp_kernel(bd1_ref, bd2_ref, bd3_ref, bias_ref, x_ref, o_ref):
    """x_ref : (tm, 128)  -- each row = 16 samples x 8 features (lane-dense).
    bd*_ref  : 16x-replicated block-diagonal weights (128,96), (96,64), (64,16).
    bias_ref : (3, 96) packed, 16x-tiled biases.
    o_ref    : (tm, 16)  -- one prediction per packed sample (contiguous in HBM)."""
    x = x_ref[...]                                   # (tm, 128) f32

    b1 = bias_ref[0:1, 0:_H1 * _PACK]                # (1, 96)
    b2 = bias_ref[1:2, 0:_H2 * _PACK]                # (1, 64)
    b3 = bias_ref[2:3, 0:_OUT * _PACK]               # (1, 16)

    # Three MXU matmuls; batch is the MXU M dim, K/N are 128/96/64 -> good
    # utilization.  Default precision per perf review (HBM-bound kernel).
    h1 = jax.nn.sigmoid(jnp.dot(x, bd1_ref[...], preferred_element_type=_F32) + b1)   # (tm, 96)
    h2 = jax.nn.sigmoid(jnp.dot(h1, bd2_ref[...], preferred_element_type=_F32) + b2)  # (tm, 64)
    h3 = jax.nn.sigmoid(jnp.dot(h2, bd3_ref[...], preferred_element_type=_F32) + b3)  # (tm, 16)

    o_ref[...] = h3.astype(o_ref.dtype)


def _round_up(a, m):
    return ((a + m - 1) // m) * m


def pack_params(params):
    """Build 16x-replicated block-diagonal weights + tiled biases from torch-style
    (out, in) Linear params.  Tiny one-time cost; the results are resident in VMEM."""
    w1, b1, w2, b2, w3, b3 = params
    eye = jnp.eye(_PACK, dtype=_F32)
    bd1 = jnp.kron(eye, w1.T.astype(_F32))           # (128, 96)
    bd2 = jnp.kron(eye, w2.T.astype(_F32))           # (96, 64)
    bd3 = jnp.kron(eye, w3.T.astype(_F32))           # (64, 16)
    biases = jnp.zeros((3, _H1 * _PACK), _F32)       # (3, 96)
    biases = biases.at[0, 0:_H1 * _PACK].set(jnp.tile(b1.astype(_F32), _PACK))
    biases = biases.at[1, 0:_H2 * _PACK].set(jnp.tile(b2.astype(_F32), _PACK))
    biases = biases.at[2, 0:_OUT * _PACK].set(jnp.tile(b3.astype(_F32), _PACK))
    return (bd1, bd2, bd3, biases)


@functools.partial(jax.jit, static_argnames=("tile_m",))
def mlp_forward(x, packed, *, tile_m=4096):
    """x: (N, 8) f32 (PyTorch convention).  Returns (N, 1) f32.

    tile_m rows of the packed (N/16, 128) array = tile_m*16 samples per grid step
    (default 65536 samples ~= 16-20 MiB VMEM with double buffering: fits the
    32 MiB default scoped VMEM on v5e/v6e and v7x's 64 MiB physical VMEM)."""
    n = x.shape[0]
    bd1, bd2, bd3, biases = packed

    n16 = _round_up(n, _PACK)
    if n16 != n:
        # Only the tiny ragged tail (< 16 rows) forces a pad pass.
        x = jnp.pad(x, ((0, n16 - n), (0, 0)))
    m = n16 // _PACK
    # Row-major (N,8) -> (N/16,128) is layout-preserving: no transpose, no copy.
    xr = x.astype(_F32).reshape(m, _IN * _PACK)

    # Tile: as big as VMEM allows, but keep >= 2 grid steps when possible so the
    # two TensorCores on v7x both get work (harmless on 1-TC v5e/v6e).
    tm = min(tile_m, _round_up(pl.cdiv(m, 2), 8))
    if tm >= m:
        tm = m                                      # single full block (always legal)
    grid = (pl.cdiv(m, tm),)

    const = lambda i: (0, 0)                        # params resident across the grid
    out = pl.pallas_call(
        mlp_kernel,
        out_shape=jax.ShapeDtypeStruct((m, _PACK), _F32),
        grid=grid,
        in_specs=[
            pl.BlockSpec(bd1.shape, const),
            pl.BlockSpec(bd2.shape, const),
            pl.BlockSpec(bd3.shape, const),
            pl.BlockSpec(biases.shape, const),
            pl.BlockSpec((tm, _IN * _PACK), lambda i: (i, 0)),
        ],
        out_specs=pl.BlockSpec((tm, _PACK), lambda i: (i, 0)),
        compiler_params=pltpu.CompilerParams(
            dimension_semantics=("parallel",),
            vmem_limit_bytes=48 * 1024 * 1024,      # headroom; still < v7x 64 MiB physical
        ),
    )(bd1, bd2, bd3, biases, xr)

    out = out.reshape(n16, 1)                       # free: same HBM layout as (N16, 1)
    if n16 != n:
        out = out[:n]
    return out


def init_params(key):
    """Mirror torch.nn.Linear init: U(-1/sqrt(fan_in), 1/sqrt(fan_in)); W is (out, in)."""
    def linear(k, fan_in, fan_out):
        kw, kb = jax.random.split(k)
        bound = 1.0 / (fan_in ** 0.5)
        w = jax.random.uniform(kw, (fan_out, fan_in), _F32, -bound, bound)
        b = jax.random.uniform(kb, (fan_out,), _F32, -bound, bound)
        return w, b

    k1, k2, k3 = jax.random.split(key, 3)
    w1, b1 = linear(k1, _IN, _H1)
    w2, b2 = linear(k2, _H1, _H2)
    w3, b3 = linear(k3, _H2, _OUT)
    return (w1, b1, w2, b2, w3, b3)


def reference_forward(x, params):
    w1, b1, w2, b2, w3, b3 = params
    h = jax.nn.sigmoid(jnp.dot(x, w1.T) + b1)
    h = jax.nn.sigmoid(jnp.dot(h, w2.T) + b2)
    return jax.nn.sigmoid(jnp.dot(h, w3.T) + b3)


if __name__ == "__main__":
    key = jax.random.PRNGKey(0)
    kx, kp = jax.random.split(key)

    params = init_params(kp)
    packed = pack_params(params)

    # Tiny batch (single packed row) and a larger ragged batch (multi-tile,
    # partial last block, tail pad).
    for batch in (8, 1000):
        x = jax.random.normal(jax.random.fold_in(kx, batch), (batch, _IN), _F32)
        out = jax.block_until_ready(mlp_forward(x, packed))
        ref = reference_forward(x, params)
        assert out.shape == (batch, 1), out.shape
        err = float(jnp.max(jnp.abs(out - ref)))
        # Default MXU precision (bf16 passes) per perf review -> ~1e-3 level.
        assert err < 5e-3, f"mismatch vs reference at batch={batch}: max abs err {err}"

    print("KERNEL_OK")
</pallas_src>

<mosaic_0001>
module attributes {stable_mosaic.version = 11 : i64} {
  func.func @mlp_kernel(%arg0: i32, %arg1: memref<128x96xf32, #tpu.memory_space<vmem>>, %arg2: memref<96x64xf32, #tpu.memory_space<vmem>>, %arg3: memref<64x16xf32, #tpu.memory_space<vmem>>, %arg4: memref<3x96xf32, #tpu.memory_space<vmem>>, %arg5: memref<1x128xf32, #tpu.memory_space<vmem>>, %arg6: memref<1x16xf32, #tpu.memory_space<vmem>>) attributes {dimension_semantics = [#tpu.dimension_semantics<parallel>], iteration_bounds = array<i64: 1>, scalar_prefetch = 0 : i64, scratch_operands = 0 : i64, tpu.core_type = #tpu.core_type<tc>, window_params = [{pipeline_mode = #tpu.pipeline_mode<synchronous>, transform_indices = @transform_0, window_bounds = array<i64: 128, 96>}, {pipeline_mode = #tpu.pipeline_mode<synchronous>, transform_indices = @transform_1, window_bounds = array<i64: 96, 64>}, {pipeline_mode = #tpu.pipeline_mode<synchronous>, transform_indices = @transform_2, window_bounds = array<i64: 64, 16>}, {pipeline_mode = #tpu.pipeline_mode<synchronous>, transform_indices = @transform_3, window_bounds = array<i64: 3, 96>}, {transform_indices = @transform_4, window_bounds = array<i64: 1, 128>}, {transform_indices = @transform_5, window_bounds = array<i64: 1, 16>}]} {
    %c0 = arith.constant 0 : index
    %c0_0 = arith.constant 0 : index
    %0 = vector.load %arg5[%c0, %c0_0] : memref<1x128xf32, #tpu.memory_space<vmem>>, vector<1x128xf32>
    %c0_1 = arith.constant 0 : index
    %c0_2 = arith.constant 0 : index
    %1 = vector.load %arg4[%c0_1, %c0_2] : memref<3x96xf32, #tpu.memory_space<vmem>>, vector<1x96xf32>
    %c1 = arith.constant 1 : index
    %c0_3 = arith.constant 0 : index
    %2 = vector.load %arg4[%c1, %c0_3] : memref<3x96xf32, #tpu.memory_space<vmem>>, vector<1x64xf32>
    %c2 = arith.constant 2 : index
    %c0_4 = arith.constant 0 : index
    %3 = vector.load %arg4[%c2, %c0_4] : memref<3x96xf32, #tpu.memory_space<vmem>>, vector<1x16xf32>
    %c0_5 = arith.constant 0 : index
    %c0_6 = arith.constant 0 : index
    %4 = vector.load %arg1[%c0_5, %c0_6] : memref<128x96xf32, #tpu.memory_space<vmem>>, vector<128x96xf32>
    %cst = arith.constant dense<0.000000e+00> : vector<1x96xf32>
    %5 = tpu.matmul %0, %4, %cst {dimension_numbers = #tpu.dot_dimension_numbers<[1], [0], [0], [1], [0, 0, 1, 1], [], []>} : vector<1x128xf32>, vector<128x96xf32>, vector<1x96xf32> -> vector<1x96xf32>
    %6 = arith.addf %5, %1 : vector<1x96xf32>
    %7 = arith.negf %6 : vector<1x96xf32>
    %8 = math.exp %7 : vector<1x96xf32>
    %cst_7 = arith.constant 1.000000e+00 : f32
    %9 = vector.broadcast %cst_7 : f32 to vector<1x96xf32>
    %10 = arith.addf %9, %8 : vector<1x96xf32>
    %11 = arith.divf %9, %10 : vector<1x96xf32>
    %c0_8 = arith.constant 0 : index
    %c0_9 = arith.constant 0 : index
    %12 = vector.load %arg2[%c0_8, %c0_9] : memref<96x64xf32, #tpu.memory_space<vmem>>, vector<96x64xf32>
    %cst_10 = arith.constant dense<0.000000e+00> : vector<1x64xf32>
    %13 = tpu.matmul %11, %12, %cst_10 {dimension_numbers = #tpu.dot_dimension_numbers<[1], [0], [0], [1], [0, 0, 1, 1], [], []>} : vector<1x96xf32>, vector<96x64xf32>, vector<1x64xf32> -> vector<1x64xf32>
    %14 = arith.addf %13, %2 : vector<1x64xf32>
    %15 = arith.negf %14 : vector<1x64xf32>
    %16 = math.exp %15 : vector<1x64xf32>
    %cst_11 = arith.constant 1.000000e+00 : f32
    %17 = vector.broadcast %cst_11 : f32 to vector<1x64xf32>
    %18 = arith.addf %17, %16 : vector<1x64xf32>
    %19 = arith.divf %17, %18 : vector<1x64xf32>
    %c0_12 = arith.constant 0 : index
    %c0_13 = arith.constant 0 : index
    %20 = vector.load %arg3[%c0_12, %c0_13] : memref<64x16xf32, #tpu.memory_space<vmem>>, vector<64x16xf32>
    %cst_14 = arith.constant dense<0.000000e+00> : vector<1x16xf32>
    %21 = tpu.matmul %19, %20, %cst_14 {dimension_numbers = #tpu.dot_dimension_numbers<[1], [0], [0], [1], [0, 0, 1, 1], [], []>} : vector<1x64xf32>, vector<64x16xf32>, vector<1x16xf32> -> vector<1x16xf32>
    %22 = arith.addf %21, %3 : vector<1x16xf32>
    %23 = arith.negf %22 : vector<1x16xf32>
    %24 = math.exp %23 : vector<1x16xf32>
    %cst_15 = arith.constant 1.000000e+00 : f32
    %25 = vector.broadcast %cst_15 : f32 to vector<1x16xf32>
    %26 = arith.addf %25, %24 : vector<1x16xf32>
    %27 = arith.divf %25, %26 : vector<1x16xf32>
    %c0_16 = arith.constant 0 : index
    %c0_17 = arith.constant 0 : index
    %28 = vector.load %arg6[%c0_16, %c0_17] : memref<1x16xf32, #tpu.memory_space<vmem>>, vector<1x16xf32>
    tpu.vector_store %arg6[%c0_16, %c0_17], %27 {strides = array<i32>} : memref<1x16xf32, #tpu.memory_space<vmem>>, vector<1x16xf32>,
    return
  }
  func.func @transform_0(%arg0: i32) -> (i32, i32) {
    %c0_i32 = arith.constant 0 : i32
    %c0_i32_0 = arith.constant 0 : i32
    %c0_i32_1 = arith.constant 0 : i32
    return %c0_i32, %c0_i32_0 : i32, i32
  }
  func.func @transform_1(%arg0: i32) -> (i32, i32) {
    %c0_i32 = arith.constant 0 : i32
    %c0_i32_0 = arith.constant 0 : i32
    %c0_i32_1 = arith.constant 0 : i32
    return %c0_i32, %c0_i32_0 : i32, i32
  }
  func.func @transform_2(%arg0: i32) -> (i32, i32) {
    %c0_i32 = arith.constant 0 : i32
    %c0_i32_0 = arith.constant 0 : i32
    %c0_i32_1 = arith.constant 0 : i32
    return %c0_i32, %c0_i32_0 : i32, i32
  }
  func.func @transform_3(%arg0: i32) -> (i32, i32) {
    %c0_i32 = arith.constant 0 : i32
    %c0_i32_0 = arith.constant 0 : i32
    %c0_i32_1 = arith.constant 0 : i32
    return %c0_i32, %c0_i32_0 : i32, i32
  }
  func.func @transform_4(%arg0: i32) -> (i32, i32) {
    %c0_i32 = arith.constant 0 : i32
    %c0_i32_0 = arith.constant 0 : i32
    return %arg0, %c0_i32 : i32, i32
  }
  func.func @transform_5(%arg0: i32) -> (i32, i32) {
    %c0_i32 = arith.constant 0 : i32
    %c0_i32_0 = arith.constant 0 : i32
    return %arg0, %c0_i32 : i32, i32
  }
}

</mosaic_0001>

<bundles_post_ra>
// kernel: mlp_forward.1
= control target key start
LH: loop header
LB: loop body
LE: loop exit
PB: predicated region body
PF: predicated region fallthrough
CT: control target
= control target key end

     0   :  { %v496_v0 = vmov 0.0|0.0   ;;  %vm497_vm0 = vmmov 0   ;;  %v498_v4 = vmov 0.0   ;;  %vm128_vm1 = vcmask 785408   ;;  %s676_s0 = inlined_call_operand.vmem [shape: f32[128,96], index: 0, kind: input, shape index: {}]   ;;  %s677_s4 = inlined_call_operand.vmem [shape: f32[1,128], index: 4, kind: input, shape index: {}]   ;;  %s678_s1 = inlined_call_operand.vmem [shape: f32[96,64], index: 1, kind: input, shape index: {}]   ;;  %s679_s3 = inlined_call_operand.vmem [shape: f32[3,96], index: 3, kind: input, shape index: {}]   ;;  %s680_s2 = inlined_call_operand.vmem [shape: f32[64,16], index: 2, kind: input, shape index: {}]   ;;  %s681_s5 = inlined_call_operand.vmem [shape: f32[1,16], index: 5, kind: output, shape index: {}]  }
   0x1   :  { %427 = vmatprep.subr.bf16.mxu0 %v496_v0  ;;  %v24_v1 = vld [vmem:[%s676_s0] sm:$0xff]  ;;  %v25_v2 = vld [vmem:[%s676_s0 + $0x8] sm:$0xff]  ;;  %v26_v3 = vld [vmem:[%s676_s0 + $0x10] sm:$0xff]  ;;  %378 = vmatprep.mubr.msk.f32.mxu0 %vm497_vm0, %v498_v4  ;;  %vm216_vm2 = vcmask 523264   ;;  %vm296_vm3 = vcmask 122880  }
   0x2   :  { %v428_v5 = vpack.c.bf16 %v25_v2, %v24_v1  ;;  %v27_v6 = vld [vmem:[%s676_s0 + $0x18] sm:$0xff]  ;;  %451 = vmatprep.subr.bf16.mxu1 %v496_v0  ;;  %405 = vmatprep.mubr.msk.f32.mxu1 %vm497_vm0, %v498_v4  ;;  %v28_v8 = vld [vmem:[%s676_s0 + $0x20] sm:$0xff]  ;;  %v29_v9 = vld [vmem:[%s676_s0 + $0x28] sm:$0xff] }
   0x3   :  { %v431_v7 = vpack.c.bf16 %v27_v6, %v26_v3  ;;  %v434_v10 = vpack.c.bf16 %v29_v9, %v28_v8  ;;  %v30_v11 = vld [vmem:[%s676_s0 + $0x30] sm:$0xff]  ;;  %v31_v12 = vld [vmem:[%s676_s0 + $0x38] sm:$0xff]  ;;  %v32_v14 = vld [vmem:[%s676_s0 + $0x40] sm:$0xff] }
   0x4   :  { %429 = vmatpush3.bf16.msra.mxu0 %v428_v5  ;;  %v437_v13 = vpack.c.bf16 %v31_v12, %v30_v11  ;;  %v33_v15 = vld [vmem:[%s676_s0 + $0x48] sm:$0xff]  ;;  %v34_v17 = vld [vmem:[%s676_s0 + $0x50] sm:$0xff]  ;;  %v35_v18 = vld [vmem:[%s676_s0 + $0x58] sm:$0xff] }
   0x5   :  { %430 = vmatprep.subr.bf16.mxu0 %v496_v0  ;;  %v440_v16 = vpack.c.bf16 %v33_v15, %v32_v14  ;;  %v443_v19 = vpack.c.bf16 %v35_v18, %v34_v17  ;;  %v36_v20 = vld [vmem:[%s676_s0 + $0x60] sm:$0xff]  ;;  %v37_v21 = vld [vmem:[%s676_s0 + $0x68] sm:$0xff]  ;;  %v38_v23 = vld [vmem:[%s676_s0 + $0x70] sm:$0xff] }
   0x6   :  { %v446_v22 = vpack.c.bf16 %v37_v21, %v36_v20  ;;  %v39_v24 = vld [vmem:[%s676_s0 + $0x78] sm:$0xff]  ;;  %v20_v26 = vld [vmem:[%s677_s4] sm:$0x1]  ;;  %v117_v28 = vld [vmem:[%s678_s1 + $0x8] sm:$0xff] }
   0x7   :  { %v449_v25 = vpack.c.bf16 %v39_v24, %v38_v23  ;;  %v116_v27 = vld [vmem:[%s678_s1] sm:$0xff]  ;;  %v118_v30 = vld [vmem:[%s678_s1 + $0x10] sm:$0xff]  ;;  %v119_v31 = vld [vmem:[%s678_s1 + $0x18] sm:$0xff] }
   0x8   :  { %432 = vmatpush3.bf16.msra.mxu0 %v431_v7  ;;  %v452_v29 = vpack.c.bf16 %v117_v28, %v116_v27  ;;  %v455_v32 = vpack.c.bf16 %v119_v31, %v118_v30  ;;  %v120_v33 = vld [vmem:[%s678_s1 + $0x20] sm:$0xff]  ;;  %v121_v34 = vld [vmem:[%s678_s1 + $0x28] sm:$0xff]  ;;  %v122_v36 = vld [vmem:[%s678_s1 + $0x30] sm:$0xff] }
   0x9   :  { %433 = vmatprep.subr.bf16.mxu0 %v496_v0  ;;  %v458_v35 = vpack.c.bf16 %v121_v34, %v120_v33  ;;  %v123_v37 = vld [vmem:[%s678_s1 + $0x38] sm:$0xff]  ;;  %v124_v39 = vld [vmem:[%s678_s1 + $0x40] sm:$0xff]  ;;  %v125_v40 = vld [vmem:[%s678_s1 + $0x48] sm:$0xff] }
   0xa   :  { %453 = vmatpush3.bf16.msra.mxu1 %v452_v29  ;;  %v461_v38 = vpack.c.bf16 %v123_v37, %v122_v36  ;;  %v464_v41 = vpack.c.bf16 %v125_v40, %v124_v39  ;;  %v126_v42 = vld [vmem:[%s678_s1 + $0x50] sm:$0xff]  ;;  %v127_v43 = vld [vmem:[%s678_s1 + $0x58] sm:$0xff]  ;;  %v21_v45 = vld [vmem:[%s679_s3] sm:$0x1] }
   0xb   :  { %454 = vmatprep.subr.bf16.mxu1 %v496_v0  ;;  %v467_v44 = vpack.c.bf16 %v127_v43, %v126_v42  ;;  %v208_v53 = vld [vmem:[%s680_s2] sm:$0xff]  ;;  %v209_v54 = vld [vmem:[%s680_s2 + $0x8] sm:$0xff]  ;;  %v210_v56 = vld [vmem:[%s680_s2 + $0x10] sm:$0xff] }
   0xc   :  { %435 = vmatpush3.bf16.msra.mxu0 %v434_v10  ;;  %v470_v55 = vpack.c.bf16 %v209_v54, %v208_v53  ;;  %v211_v57 = vld [vmem:[%s680_s2 + $0x18] sm:$0xff]  ;;  %v212_v59 = vld [vmem:[%s680_s2 + $0x20] sm:$0xff]  ;;  %v213_v60 = vld [vmem:[%s680_s2 + $0x28] sm:$0xff] }
   0xd   :  { %436 = vmatprep.subr.bf16.mxu0 %v496_v0  ;;  %v473_v58 = vpack.c.bf16 %v211_v57, %v210_v56  ;;  %v476_v61 = vpack.c.bf16 %v213_v60, %v212_v59  ;;  %v214_v62 = vld [vmem:[%s680_s2 + $0x30] sm:$0xff]  ;;  %v215_v63 = vld [vmem:[%s680_s2 + $0x38] sm:$0xff]  ;;  %v22_v2 = vld [vmem:[%s679_s3 + $0x1] sm:$0x1] }
   0xe   :  { %456 = vmatpush3.bf16.msra.mxu1 %v455_v32  ;;  %v479_v1 = vpack.c.bf16 %v215_v63, %v214_v62 }
   0xf   :  { %457 = vmatprep.subr.bf16.mxu1 %v496_v0 }
  0x10   :  { %438 = vmatpush3.bf16.msra.mxu0 %v437_v13 }
  0x11   :  { %439 = vmatprep.subr.bf16.mxu0 %v496_v0 }
  0x12   :  { %459 = vmatpush3.bf16.msra.mxu1 %v458_v35 }
  0x13   :  { %460 = vmatprep.subr.bf16.mxu1 %v496_v0 }
  0x14   :  { %441 = vmatpush3.bf16.msra.mxu0 %v440_v16 }
  0x15   :  { %442 = vmatprep.subr.bf16.mxu0 %v496_v0 }
  0x16   :  { %462 = vmatpush3.bf16.msra.mxu1 %v461_v38 }
  0x17   :  { %463 = vmatprep.subr.bf16.mxu1 %v496_v0 }
  0x18   :  { %444 = vmatpush3.bf16.msra.mxu0 %v443_v19 }
  0x19   :  { %445 = vmatprep.subr.bf16.mxu0 %v496_v0 }
  0x1a   :  { %465 = vmatpush3.bf16.msra.mxu1 %v464_v41 }
  0x1b   :  { %466 = vmatprep.subr.bf16.mxu1 %v496_v0 }
  0x1c   :  { %447 = vmatpush3.bf16.msra.mxu0 %v446_v22 }
  0x1d   :  { %448 = vmatprep.subr.bf16.mxu0 %v496_v0 }
  0x1e   :  { %468 = vmatpush3.bf16.msra.mxu1 %v467_v44 }
  0x1f   :  { %469 = vmatprep.subr.bf16.mxu1 %v496_v0 }
  0x20   :  { %450 = vmatpush3.bf16.msra.mxu0 %v449_v25 }
  0x23   :  { %379 = vmatmul.mubr.f32.vlgmr.msra.gmra.mrb[0].mxu0 %v20_v26 }
  0xf6   :  { %v106_v46 = vpop.f32.mrb[0].mxu0 }
  0xf7   :  { %v107_v47 = vadd.f32 %v106_v46, %v21_v45  ;;  %v380_v48 = vpop.f32.mrb[1].mxu0 }
  0xf9   :  { %v302_v49 = vmul.f32 -1.442695, %v107_v47 }
  0xfb   :  { %484 = vpow2.f32 %v302_v49 }
 0x105   :  { %v485_v50 = vpop.eup %484 }
 0x106   :  { %v113_v51 = vadd.f32 1.0, %v485_v50 }
 0x108   :  { %486 = vrcp.f32 %v113_v51 }
 0x112   :  { %v487_v52 = vpop.eup %486 }
 0x113   :  { %406 = vmatmul.mubr.msk.f32.vlgmr.msra.gmra.mrb[0].mxu1 %vm128_vm1, %v487_v52 }
 0x114   :  { %424 = vmatprep.mubr.msk.f32.mxu1 %vm497_vm0, %v498_v4  ;;  %471 = vmatpush3.bf16.msra.mxu1 %v470_v55 }
 0x115   :  { %472 = vmatprep.subr.bf16.mxu1 %v496_v0 }
 0x118   :  { %474 = vmatpush3.bf16.msra.mxu1 %v473_v58 }
 0x119   :  { %475 = vmatprep.subr.bf16.mxu1 %v496_v0 }
 0x11c   :  { %477 = vmatpush3.bf16.msra.mxu1 %v476_v61 }
 0x11d   :  { %478 = vmatprep.subr.bf16.mxu1 %v496_v0  ;;  %v23_v0 = vld [vmem:[%s679_s3 + $0x2] sm:$0x1] }
 0x120   :  { %480 = vmatpush3.bf16.msra.mxu1 %v479_v1 }
 0x1e6   :  { %v198_v3 = vpop.f32.mrb[0].mxu1 }
 0x1e7   :  { %v199_v4 = vadd.f32 %v198_v3, %v22_v2  ;;  %v407_v5 = vpop.f32.mrb[1].mxu1 }
 0x1e9   :  { %v304_v6 = vmul.f32 -1.442695, %v199_v4 }
 0x1eb   :  { %488 = vpow2.f32 %v304_v6 }
 0x1f5   :  { %v489_v7 = vpop.eup %488 }
 0x1f6   :  { %v205_v8 = vadd.f32 1.0, %v489_v7 }
 0x1f8   :  { %490 = vrcp.f32 %v205_v8 }
 0x202   :  { %v491_v9 = vpop.eup %490 }
 0x203   :  { %425 = vmatmul.mubr.msk.f32.vlgmr.msra.gmra.mrb[2].mxu1 %vm216_vm2, %v491_v9 }
 0x2d6   :  { %v286_v10 = vpop.f32.mrb[2].mxu1 }
 0x2d7   :  { %v287_v11 = vadd.f32 %v286_v10, %v23_v0  ;;  %v426_v12 = vpop.f32.mrb[3].mxu1 }
 0x2d9   :  { %v306_v13 = vmul.f32 -1.442695, %v287_v11 }
 0x2db   :  { %492 = vpow2.f32 %v306_v13 }
 0x2e5   :  { %v493_v14 = vpop.eup %492 }
 0x2e6   :  { %v293_v15 = vadd.f32 1.0, %v493_v14 }
 0x2e8   :  { %494 = vrcp.f32 %v293_v15 }
 0x2f2   :  { %v495_v16 = vpop.eup %494 }
 0x2f3   :  { %297 = vst.msk [vmem:[%s681_s5] sm:$0x1] %vm296_vm3, %v495_v16 }

</bundles_post_ra>
